<compile_context>
chip_gen: v7x
topology: tpu7x:2x2x1
jax: 0.10.0
libtpu: 0.0.40
codegen_flags: <defaults>
</compile_context>

<pallas_src>
import jax
import jax.numpy as jnp
from jax.experimental import pallas as pl
from jax.experimental.pallas import tpu as pltpu


def _sobel_kernel(x_ref, x_hbm, o_ref, top_ref, bot_ref, sem):
    """x_ref:   (1, TH, W)    current row tile (auto-pipelined VMEM block)
       x_hbm:   (N, H, W)     full image left in HBM (used for 1-row halos only)
       o_ref:   (1, 2, TH, W) output tile (channel 0 = edge_x, 1 = edge_y)
       top_ref, bot_ref: (1, W) VMEM halo rows; sem: (2,) DMA semaphores."""
    n = pl.program_id(0)
    r = pl.program_id(1)
    _, TH, W = x_ref.shape
    H = x_hbm.shape[1]

    # ---- fetch the two 1-row halos from HBM (row index clamped at edges) ----
    top_src = jnp.maximum(r * TH - 1, 0)
    bot_src = jnp.minimum(r * TH + TH, H - 1)
    cp_top = pltpu.make_async_copy(
        x_hbm.at[n, pl.ds(top_src, 1), :], top_ref, sem.at[0])
    cp_bot = pltpu.make_async_copy(
        x_hbm.at[n, pl.ds(bot_src, 1), :], bot_ref, sem.at[1])
    cp_top.start()
    cp_bot.start()

    p = x_ref[0]                                            # (TH, W) f32
    row = jax.lax.broadcasted_iota(jnp.int32, (TH, W), 0)
    col = jax.lax.broadcasted_iota(jnp.int32, (TH, W), 1)

    def shift(a, k, axis):
        """Wrap-shift so out[idx] == a[idx - k] along `axis` (wrapped rows/cols
        are fixed up by the caller).  Uses the XLU roll when layout-aligned."""
        size = a.shape[axis]
        k = k % size
        aligned = (size % 128 == 0) if axis == 1 else (size % 8 == 0)
        if aligned:
            return pltpu.roll(a, shift=k, axis=axis)        # XLU slot (free-ish)
        return jnp.roll(a, k, axis=axis)                    # safe fallback

    cp_top.wait()
    cp_bot.wait()

    # Zero halo rows outside the image (conv2d padding=1 semantics).
    @pl.when(r == 0)
    def _():
        top_ref[...] = jnp.zeros_like(top_ref)

    @pl.when(r == pl.num_programs(1) - 1)
    def _():
        bot_ref[...] = jnp.zeros_like(bot_ref)

    up = jnp.where(row == 0, top_ref[...], shift(p, 1, axis=0))          # p[i-1, j]
    down = jnp.where(row == TH - 1, bot_ref[...], shift(p, -1, axis=0))  # p[i+1, j]

    # Separable Sobel: gx = (1,2,1)^T (x) (1,0,-1),  gy = (1,0,-1)^T (x) (1,2,1).
    s = up + 2.0 * p + down
    d = up - down

    def left(a):    # a[:, j-1] with zero padding at j == 0
        return jnp.where(col == 0, 0.0, shift(a, 1, axis=1))

    def right(a):   # a[:, j+1] with zero padding at j == W-1
        return jnp.where(col == W - 1, 0.0, shift(a, -1, axis=1))

    o_ref[0, 0] = left(s) - right(s)                        # edge_x channel
    o_ref[0, 1] = left(d) + 2.0 * d + right(d)              # edge_y channel


def _pick_row_tile(H, W, target_bytes=4 * 1024 * 1024):
    """Largest TH with TH | H and TH % 8 == 0 (or TH == H) such that one grid
    step's f32 input + output rows stay around `target_bytes`, so the
    double-buffered working set fits default scoped VMEM on v5e/v6e/v7x."""
    bytes_per_row = 3 * W * 4                    # 1 input row + 2 output rows, f32
    max_rows = max(8, target_bytes // bytes_per_row)
    if H <= max_rows:
        return H
    th = (int(max_rows) // 8) * 8
    while th >= 8:
        if H % th == 0:
            return th
        th -= 8
    return H                                     # no aligned divisor: whole image


def sobel(x, *, row_tile=None):
    """x: (N, 1, H, W) -> (N, 2, H, W) fixed-weight Sobel conv (padding=1)."""
    N, C, H, W = x.shape
    assert C == 1, "Sobel conv expects a single input channel"
    x3 = x.astype(jnp.float32).reshape(N, H, W)  # free (C == 1); no pad copy

    TH = _pick_row_tile(H, W) if row_tile is None else row_tile
    assert H % TH == 0 and (TH % 8 == 0 or TH == H), "bad row tile"
    grid = (N, H // TH)

    # Bandwidth-bound kernel: read x once, write 2x once; ~10 VPU ops / pixel.
    cost = pl.CostEstimate(
        flops=10 * N * H * W,
        transcendentals=0,
        bytes_accessed=3 * N * H * W * 4,
    )

    per_step_bytes = 3 * TH * W * 4              # one input + one output block
    vmem_limit = min(64 * 1024 * 1024, max(32 * 1024 * 1024, 4 * per_step_bytes))

    out = pl.pallas_call(
        _sobel_kernel,
        out_shape=jax.ShapeDtypeStruct((N, 2, H, W), jnp.float32),
        grid=grid,
        in_specs=[
            pl.BlockSpec((1, TH, W), lambda n, r: (n, r, 0)),  # pipelined tile
            pl.BlockSpec(memory_space=pl.ANY),                 # raw HBM (halo rows)
        ],
        out_specs=pl.BlockSpec((1, 2, TH, W), lambda n, r: (n, 0, r, 0)),
        scratch_shapes=[
            pltpu.VMEM((1, W), jnp.float32),                   # top halo row
            pltpu.VMEM((1, W), jnp.float32),                   # bottom halo row
            pltpu.SemaphoreType.DMA((2,)),
        ],
        compiler_params=pltpu.CompilerParams(
            dimension_semantics=("parallel", "parallel"),
            vmem_limit_bytes=vmem_limit,
        ),
        cost_estimate=cost,
    )(x3, x3)
    # PyTorch does out.view(-1, 2, H, W), which is identity here.
    return out


def _sobel_reference(x):
    """Pure-JAX reference (explicit shifts on a zero-padded copy)."""
    N, _, H, W = x.shape
    p = jnp.pad(x[:, 0].astype(jnp.float32), ((0, 0), (1, 1), (1, 1)))
    gx = (p[:, 0:H, 0:W] - p[:, 0:H, 2:W + 2]
          + 2 * p[:, 1:H + 1, 0:W] - 2 * p[:, 1:H + 1, 2:W + 2]
          + p[:, 2:H + 2, 0:W] - p[:, 2:H + 2, 2:W + 2])
    gy = (p[:, 0:H, 0:W] + 2 * p[:, 0:H, 1:W + 1] + p[:, 0:H, 2:W + 2]
          - p[:, 2:H + 2, 0:W] - 2 * p[:, 2:H + 2, 1:W + 1] - p[:, 2:H + 2, 2:W + 2])
    return jnp.stack([gx, gy], axis=1)


if __name__ == "__main__":
    key = jax.random.PRNGKey(0)
    N, C, H, W = 2, 1, 16, 128            # W multiple of 128 -> lane-dense output
    x = jax.random.normal(key, (N, C, H, W), dtype=jnp.float32)

    ref = _sobel_reference(x)

    # Multi-row-tile path (exercises the cross-tile halo DMA): grid = (N, 2).
    out_tiled = jax.block_until_ready(sobel(x, row_tile=8))
    assert out_tiled.shape == (N, 2, H, W)
    assert jnp.allclose(out_tiled, ref, atol=1e-5, rtol=1e-5)

    # Automatic tile selection (whole image per step here): grid = (N, 1).
    out_auto = jax.block_until_ready(sobel(x))
    assert jnp.allclose(out_auto, ref, atol=1e-5, rtol=1e-5)

    print("KERNEL_OK")
</pallas_src>

<mosaic_0001>
module attributes {stable_mosaic.version = 11 : i64} {
  func.func @_sobel_kernel(%arg0: i32, %arg1: i32, %arg2: memref<1x8x128xf32, #tpu.memory_space<vmem>>, %arg3: memref<2x16x128xf32, #tpu.memory_space<any>>, %arg4: memref<1x2x8x128xf32, #tpu.memory_space<vmem>>, %arg5: memref<1x128xf32, #tpu.memory_space<vmem>>, %arg6: memref<1x128xf32, #tpu.memory_space<vmem>>, %arg7: memref<2x!tpu.dma_semaphore, #tpu.memory_space<semaphore_mem>>) attributes {dimension_semantics = [#tpu.dimension_semantics<parallel>, #tpu.dimension_semantics<parallel>], iteration_bounds = array<i64: 2, 2>, scalar_prefetch = 0 : i64, scratch_operands = 3 : i64, tpu.core_type = #tpu.core_type<tc>, window_params = [{transform_indices = @transform_0, window_bounds = array<i64: 1, 8, 128>}, {}, {transform_indices = @transform_2, window_bounds = array<i64: 1, 2, 8, 128>}]} {
    %c8_i32 = arith.constant 8 : i32
    %0 = arith.muli %arg1, %c8_i32 : i32
    %c1_i32 = arith.constant 1 : i32
    %1 = arith.subi %0, %c1_i32 : i32
    %c0_i32 = arith.constant 0 : i32
    %2 = arith.maxsi %1, %c0_i32 : i32
    %c8_i32_0 = arith.constant 8 : i32
    %3 = arith.muli %arg1, %c8_i32_0 : i32
    %c8_i32_1 = arith.constant 8 : i32
    %4 = arith.addi %3, %c8_i32_1 : i32
    %c15_i32 = arith.constant 15 : i32
    %5 = arith.minsi %4, %c15_i32 : i32
    %c0_i32_2 = arith.constant 0 : i32
    %c0_i32_3 = arith.constant 0 : i32
    %6 = tpu.memref_slice %arg3[%arg0, %2, %c0_i32_3] : memref<2x16x128xf32, #tpu.memory_space<any>> -> memref<1x1x128xf32, #tpu.memory_space<any>>
    %7 = tpu.memref_squeeze %6 : memref<1x1x128xf32, #tpu.memory_space<any>> -> memref<1x128xf32, #tpu.memory_space<any>>
    %8 = tpu.memref_slice %arg7[%c0_i32_2] : memref<2x!tpu.dma_semaphore, #tpu.memory_space<semaphore_mem>> -> memref<1x!tpu.dma_semaphore, #tpu.memory_space<semaphore_mem>>
    %9 = tpu.memref_squeeze %8 : memref<1x!tpu.dma_semaphore, #tpu.memory_space<semaphore_mem>> -> memref<!tpu.dma_semaphore, #tpu.memory_space<semaphore_mem>>
    tpu.enqueue_dma source(%7 : memref<1x128xf32, #tpu.memory_space<any>>) target(%arg5 : memref<1x128xf32, #tpu.memory_space<vmem>>) target_semaphore(%9 : memref<!tpu.dma_semaphore, #tpu.memory_space<semaphore_mem>>)
    %c1_i32_4 = arith.constant 1 : i32
    %c0_i32_5 = arith.constant 0 : i32
    %10 = tpu.memref_slice %arg3[%arg0, %5, %c0_i32_5] : memref<2x16x128xf32, #tpu.memory_space<any>> -> memref<1x1x128xf32, #tpu.memory_space<any>>
    %11 = tpu.memref_squeeze %10 : memref<1x1x128xf32, #tpu.memory_space<any>> -> memref<1x128xf32, #tpu.memory_space<any>>
    %12 = tpu.memref_slice %arg7[%c1_i32_4] : memref<2x!tpu.dma_semaphore, #tpu.memory_space<semaphore_mem>> -> memref<1x!tpu.dma_semaphore, #tpu.memory_space<semaphore_mem>>
    %13 = tpu.memref_squeeze %12 : memref<1x!tpu.dma_semaphore, #tpu.memory_space<semaphore_mem>> -> memref<!tpu.dma_semaphore, #tpu.memory_space<semaphore_mem>>
    tpu.enqueue_dma source(%11 : memref<1x128xf32, #tpu.memory_space<any>>) target(%arg6 : memref<1x128xf32, #tpu.memory_space<vmem>>) target_semaphore(%13 : memref<!tpu.dma_semaphore, #tpu.memory_space<semaphore_mem>>)
    %c0 = arith.constant 0 : index
    %c0_6 = arith.constant 0 : index
    %c0_7 = arith.constant 0 : index
    %14 = vector.load %arg2[%c0, %c0_6, %c0_7] : memref<1x8x128xf32, #tpu.memory_space<vmem>>, vector<1x8x128xf32>
    %15 = vector.shape_cast %14 : vector<1x8x128xf32> to vector<8x128xf32>
    %16 = tpu.iota {dimensions = array<i32: 0>} : vector<8x128xi32>
    %17 = tpu.iota {dimensions = array<i32: 1>} : vector<8x128xi32>
    %c0_i32_8 = arith.constant 0 : i32
    %c0_i32_9 = arith.constant 0 : i32
    %18 = tpu.memref_slice %arg3[%arg0, %2, %c0_i32_9] : memref<2x16x128xf32, #tpu.memory_space<any>> -> memref<1x1x128xf32, #tpu.memory_space<any>>
    %19 = tpu.memref_squeeze %18 : memref<1x1x128xf32, #tpu.memory_space<any>> -> memref<1x128xf32, #tpu.memory_space<any>>
    %20 = tpu.memref_slice %arg7[%c0_i32_8] : memref<2x!tpu.dma_semaphore, #tpu.memory_space<semaphore_mem>> -> memref<1x!tpu.dma_semaphore, #tpu.memory_space<semaphore_mem>>
    %21 = tpu.memref_squeeze %20 : memref<1x!tpu.dma_semaphore, #tpu.memory_space<semaphore_mem>> -> memref<!tpu.dma_semaphore, #tpu.memory_space<semaphore_mem>>
    tpu.wait_dma2 semaphore(%21 : memref<!tpu.dma_semaphore, #tpu.memory_space<semaphore_mem>>) src(%19 : memref<1x128xf32, #tpu.memory_space<any>>) dst(%arg5 : memref<1x128xf32, #tpu.memory_space<vmem>>)
    %c1_i32_10 = arith.constant 1 : i32
    %c0_i32_11 = arith.constant 0 : i32
    %22 = tpu.memref_slice %arg3[%arg0, %5, %c0_i32_11] : memref<2x16x128xf32, #tpu.memory_space<any>> -> memref<1x1x128xf32, #tpu.memory_space<any>>
    %23 = tpu.memref_squeeze %22 : memref<1x1x128xf32, #tpu.memory_space<any>> -> memref<1x128xf32, #tpu.memory_space<any>>
    %24 = tpu.memref_slice %arg7[%c1_i32_10] : memref<2x!tpu.dma_semaphore, #tpu.memory_space<semaphore_mem>> -> memref<1x!tpu.dma_semaphore, #tpu.memory_space<semaphore_mem>>
    %25 = tpu.memref_squeeze %24 : memref<1x!tpu.dma_semaphore, #tpu.memory_space<semaphore_mem>> -> memref<!tpu.dma_semaphore, #tpu.memory_space<semaphore_mem>>
    tpu.wait_dma2 semaphore(%25 : memref<!tpu.dma_semaphore, #tpu.memory_space<semaphore_mem>>) src(%23 : memref<1x128xf32, #tpu.memory_space<any>>) dst(%arg6 : memref<1x128xf32, #tpu.memory_space<vmem>>)
    %c0_i32_12 = arith.constant 0 : i32
    %26 = arith.cmpi eq, %arg1, %c0_i32_12 : i32
    %27 = arith.extui %26 : i1 to i32
    %c0_i32_13 = arith.constant 0 : i32
    %28 = arith.cmpi ne, %27, %c0_i32_13 : i32
    scf.if %28 {
      %cst_42 = arith.constant 0.000000e+00 : f32
      %82 = vector.broadcast %cst_42 : f32 to vector<1x128xf32>
      %c0_43 = arith.constant 0 : index
      %c0_44 = arith.constant 0 : index
      %83 = vector.load %arg5[%c0_43, %c0_44] : memref<1x128xf32, #tpu.memory_space<vmem>>, vector<1x128xf32>
      tpu.vector_store %arg5[%c0_43, %c0_44], %82 {strides = array<i32>} : memref<1x128xf32, #tpu.memory_space<vmem>>, vector<1x128xf32>,
    } else {
    }
    %c1_i32_14 = arith.constant 1 : i32
    %29 = arith.cmpi eq, %arg1, %c1_i32_14 : i32
    %30 = arith.extui %29 : i1 to i32
    %c0_i32_15 = arith.constant 0 : i32
    %31 = arith.cmpi ne, %30, %c0_i32_15 : i32
    scf.if %31 {
      %cst_42 = arith.constant 0.000000e+00 : f32
      %82 = vector.broadcast %cst_42 : f32 to vector<1x128xf32>
      %c0_43 = arith.constant 0 : index
      %c0_44 = arith.constant 0 : index
      %83 = vector.load %arg6[%c0_43, %c0_44] : memref<1x128xf32, #tpu.memory_space<vmem>>, vector<1x128xf32>
      tpu.vector_store %arg6[%c0_43, %c0_44], %82 {strides = array<i32>} : memref<1x128xf32, #tpu.memory_space<vmem>>, vector<1x128xf32>,
    } else {
    }
    %c0_i32_16 = arith.constant 0 : i32
    %32 = vector.broadcast %c0_i32_16 : i32 to vector<8x128xi32>
    %33 = arith.cmpi eq, %16, %32 : vector<8x128xi32>
    %c0_17 = arith.constant 0 : index
    %c0_18 = arith.constant 0 : index
    %34 = vector.load %arg5[%c0_17, %c0_18] : memref<1x128xf32, #tpu.memory_space<vmem>>, vector<1x128xf32>
    %c1_i32_19 = arith.constant 1 : i32
    %35 = tpu.dynamic_rotate %15 by %c1_i32_19 dim 0 : vector<8x128xf32>, i32 -> vector<8x128xf32>
    %36 = vector.shape_cast %34 : vector<1x128xf32> to vector<1x128xf32>
    %37 = vector.broadcast %36 : vector<1x128xf32> to vector<8x128xf32>
    %38 = arith.select %33, %37, %35 : vector<8x128xi1>, vector<8x128xf32>
    %c7_i32 = arith.constant 7 : i32
    %39 = vector.broadcast %c7_i32 : i32 to vector<8x128xi32>
    %40 = arith.cmpi eq, %16, %39 : vector<8x128xi32>
    %c0_20 = arith.constant 0 : index
    %c0_21 = arith.constant 0 : index
    %41 = vector.load %arg6[%c0_20, %c0_21] : memref<1x128xf32, #tpu.memory_space<vmem>>, vector<1x128xf32>
    %c7_i32_22 = arith.constant 7 : i32
    %42 = tpu.dynamic_rotate %15 by %c7_i32_22 dim 0 : vector<8x128xf32>, i32 -> vector<8x128xf32>
    %43 = vector.shape_cast %41 : vector<1x128xf32> to vector<1x128xf32>
    %44 = vector.broadcast %43 : vector<1x128xf32> to vector<8x128xf32>
    %45 = arith.select %40, %44, %42 : vector<8x128xi1>, vector<8x128xf32>
    %cst = arith.constant 2.000000e+00 : f32
    %46 = vector.broadcast %cst : f32 to vector<8x128xf32>
    %47 = arith.mulf %46, %15 : vector<8x128xf32>
    %48 = arith.addf %38, %47 : vector<8x128xf32>
    %49 = arith.addf %48, %45 : vector<8x128xf32>
    %50 = arith.subf %38, %45 : vector<8x128xf32>
    %c0_i32_23 = arith.constant 0 : i32
    %51 = vector.broadcast %c0_i32_23 : i32 to vector<8x128xi32>
    %52 = arith.cmpi eq, %17, %51 : vector<8x128xi32>
    %c1_i32_24 = arith.constant 1 : i32
    %53 = tpu.dynamic_rotate %49 by %c1_i32_24 dim 1 : vector<8x128xf32>, i32 -> vector<8x128xf32>
    %cst_25 = arith.constant 0.000000e+00 : f32
    %54 = vector.broadcast %cst_25 : f32 to vector<8x128xf32>
    %55 = arith.select %52, %54, %53 : vector<8x128xi1>, vector<8x128xf32>
    %c127_i32 = arith.constant 127 : i32
    %56 = vector.broadcast %c127_i32 : i32 to vector<8x128xi32>
    %57 = arith.cmpi eq, %17, %56 : vector<8x128xi32>
    %c127_i32_26 = arith.constant 127 : i32
    %58 = tpu.dynamic_rotate %49 by %c127_i32_26 dim 1 : vector<8x128xf32>, i32 -> vector<8x128xf32>
    %cst_27 = arith.constant 0.000000e+00 : f32
    %59 = vector.broadcast %cst_27 : f32 to vector<8x128xf32>
    %60 = arith.select %57, %59, %58 : vector<8x128xi1>, vector<8x128xf32>
    %61 = arith.subf %55, %60 : vector<8x128xf32>
    %c0_28 = arith.constant 0 : index
    %c0_29 = arith.constant 0 : index
    %c0_30 = arith.constant 0 : index
    %c0_31 = arith.constant 0 : index
    %62 = vector.load %arg4[%c0_28, %c0_29, %c0_30, %c0_31] : memref<1x2x8x128xf32, #tpu.memory_space<vmem>>, vector<1x1x8x128xf32>
    %63 = vector.shape_cast %62 : vector<1x1x8x128xf32> to vector<8x128xf32>
    %64 = vector.shape_cast %61 : vector<8x128xf32> to vector<1x1x8x128xf32>
    tpu.vector_store %arg4[%c0_28, %c0_29, %c0_30, %c0_31], %64 {strides = array<i32>} : memref<1x2x8x128xf32, #tpu.memory_space<vmem>>, vector<1x1x8x128xf32>,
    %c0_i32_32 = arith.constant 0 : i32
    %65 = vector.broadcast %c0_i32_32 : i32 to vector<8x128xi32>
    %66 = arith.cmpi eq, %17, %65 : vector<8x128xi32>
    %c1_i32_33 = arith.constant 1 : i32
    %67 = tpu.dynamic_rotate %50 by %c1_i32_33 dim 1 : vector<8x128xf32>, i32 -> vector<8x128xf32>
    %cst_34 = arith.constant 0.000000e+00 : f32
    %68 = vector.broadcast %cst_34 : f32 to vector<8x128xf32>
    %69 = arith.select %66, %68, %67 : vector<8x128xi1>, vector<8x128xf32>
    %cst_35 = arith.constant 2.000000e+00 : f32
    %70 = vector.broadcast %cst_35 : f32 to vector<8x128xf32>
    %71 = arith.mulf %70, %50 : vector<8x128xf32>
    %72 = arith.addf %69, %71 : vector<8x128xf32>
    %c127_i32_36 = arith.constant 127 : i32
    %73 = vector.broadcast %c127_i32_36 : i32 to vector<8x128xi32>
    %74 = arith.cmpi eq, %17, %73 : vector<8x128xi32>
    %c127_i32_37 = arith.constant 127 : i32
    %75 = tpu.dynamic_rotate %50 by %c127_i32_37 dim 1 : vector<8x128xf32>, i32 -> vector<8x128xf32>
    %cst_38 = arith.constant 0.000000e+00 : f32
    %76 = vector.broadcast %cst_38 : f32 to vector<8x128xf32>
    %77 = arith.select %74, %76, %75 : vector<8x128xi1>, vector<8x128xf32>
    %78 = arith.addf %72, %77 : vector<8x128xf32>
    %c0_39 = arith.constant 0 : index
    %c1 = arith.constant 1 : index
    %c0_40 = arith.constant 0 : index
    %c0_41 = arith.constant 0 : index
    %79 = vector.load %arg4[%c0_39, %c1, %c0_40, %c0_41] : memref<1x2x8x128xf32, #tpu.memory_space<vmem>>, vector<1x1x8x128xf32>
    %80 = vector.shape_cast %79 : vector<1x1x8x128xf32> to vector<8x128xf32>
    %81 = vector.shape_cast %78 : vector<8x128xf32> to vector<1x1x8x128xf32>
    tpu.vector_store %arg4[%c0_39, %c1, %c0_40, %c0_41], %81 {strides = array<i32>} : memref<1x2x8x128xf32, #tpu.memory_space<vmem>>, vector<1x1x8x128xf32>,
    return
  }
  func.func @transform_0(%arg0: i32, %arg1: i32) -> (i32, i32, i32) {
    %c0_i32 = arith.constant 0 : i32
    %c0_i32_0 = arith.constant 0 : i32
    return %arg0, %arg1, %c0_i32 : i32, i32, i32
  }
  func.func @transform_2(%arg0: i32, %arg1: i32) -> (i32, i32, i32, i32) {
    %c0_i32 = arith.constant 0 : i32
    %c0_i32_0 = arith.constant 0 : i32
    %c0_i32_1 = arith.constant 0 : i32
    return %arg0, %c0_i32, %arg1, %c0_i32_0 : i32, i32, i32, i32
  }
}

</mosaic_0001>

<bundles_post_ra>
// kernel: tpu_custom_call.1
= control target key start
LH: loop header
LB: loop body
LE: loop exit
PB: predicated region body
PF: predicated region fallthrough
CT: control target
= control target key end

     0   :  { %s945_s0 = inlined_call_operand.hbm [shape: f32[2,16,128], index: 0, kind: input, shape index: {}]   ;;  %s946_s1 = inlined_call_operand.hbm [shape: f32[2,16,128], index: 1, kind: input, shape index: {}]   ;;  %s947_s2 = inlined_call_operand.hbm [shape: f32[2,2,16,128], index: 2, kind: output, shape index: {}]  }
   0x1   :  { %952 = sst [smem:[#allocation22_spill]] %s945_s0 }
   0x2   :  { %7 = vsyncpa [#allocation6], 0 }
   0x3   :  { %9 = vsyncpa [#allocation6 + $0x1], 0 }
   0x4   :  { %10 = vsyncpa [#allocation7], 0 }
   0x5   :  { %12 = vsyncpa [#allocation7 + $0x1], 0  ;;  %s699_s9 = smov 0   ;;  %s701_s10 = smov 0  }
   0x6   :  { %s703_s11 = smov 0   ;;  %s705_s12 = smov 0  }
   0x7   :  { %s707_s13 = smov 0   ;;  %s709_s14 = smov 0  }
   0x8   :  { %s711_s15 = smov 0   ;;  %s713_s16 = smov 0  }
   0x9 LB: > { %953 = sst [smem:[#allocation19_spill]] %s667_s15  ;;  %s377_s17 = sadd.s32 4294967295, %s671_s16   ;;  %s671_s16 = sphi %s713_s16, %s18_s16   ;;  %s667_s15 = sphi %s711_s15, %s969_s15   ;;  %s663_s14 = sphi %s709_s14, %s974_s14   ;;  %s659_s13 = sphi %s707_s13, %s967_s13   ;;  %s655_s12 = sphi %s705_s12, %s973_s12   ;;  %s651_s11 = sphi %s703_s11, %s972_s11   ;;  %s647_s10 = sphi %s701_s10, %s971_s10   ;;  %s643_s9 = sphi %s699_s9, %s970_s9  }
   0xa   : > { %s378_s18 = sadd.s32 4294967294, %s671_s16   ;;  %s27_s19 = sadd.s32 1, %s663_s14 }
   0xb   : > { %s30_s20 = sadd.s32 1, %s667_s15  ;;  %p28_p0 = scmp.ge.s32.totalorder %s27_s19, 2 }
   0xc   : > { %s39_s21 = sadd.s32 1, %s651_s11  ;;  %p46_p1 = scmp.ne.s32.totalorder %s651_s11, %s647_s10 }
   0xd   : > { %p47_p2 = scmp.eq.s32.totalorder %s671_s16, 0  ;;  %s976_s19 = smov (%p28_p0, %s27_s19), 0 }
   0xe   : > { %954 = sst [smem:[#allocation20_spill]] %s976_s19  ;;  %s978_s20 = smov (!%p28_p0, %s30_s20), %s667_s15 }
   0xf   : > { %s35_s22 = ssub.s32 %s663_s14, %s976_s19  ;;  %p752_p3 = por %p47_p2, %p46_p1 }
  0x10   : > { %p32_p4 = scmp.ge.s32.totalorder %s978_s20, 2  ;;  %p52_p5 = scmp.ne.s32.totalorder %s647_s10, %s643_s9 }
  0x11   : > { %p53_p6 = scmp.eq.s32.totalorder %s377_s17, 0  ;;  %p78_p7 = scmp.eq.s32.totalorder %s377_s17, 3 }
  0x12   : > { %s980_s20 = smov (%p32_p4, %s978_s20), 0  ;;  %p84_p10 = scmp.eq.s32.totalorder %s378_s18, 3 }
  0x13   : > { %956 = sst [smem:[#allocation21_spill]] %s980_s20  ;;  %p760_p8 = por %p53_p6, %p52_p5 }
  0x14   : > { %p764_p9 = por %p78_p7, %p46_p1  ;;  %s34_s26 = ssub.s32 %s667_s15, %s980_s20 }
  0x15   : > { %s36_s27 = sor.u32 %s35_s22, %s34_s26  ;;  %p770_p12 = por %p84_p10, %p52_p5 }
  0x16   : > { %s958_s25 = scalar_select %p764_p9, 1, 0 }
  0x17   : > { %p37_p11 = scmp.eq.s32.totalorder %s36_s27, 0  ;;  %p416_p13 = scmp.lt.s32.totalorder %s671_s16, 4 }
  0x18   : > { %s959_s28 = scalar_select %p770_p12, 1, 0 }
  0x19   : > { %s104_s29 = sand.u32 1, %s651_s11   ;;  %s382_s4 = sshll.u32 %s667_s15, 1 }
  0x1a   : > { %s777_s30 = scalar_select %p37_p11, %s651_s11, %s39_s21  }
  0x1b   : > { %s381_s3 = sshll.u32 %s104_s29, 3  ;;  %s113_s5 = sadd.s32 %s663_s14, %s382_s4 }
  0x1c   : > { %s108_s6 = scalar_lea.vmem [#allocation5], %s381_s3  ;;  %s383_s8 = sshll.u32 %s113_s5, 7 }
  0x1d   : > { %s117_s7 = sshll.u32 %s108_s6, 4  ;;  %s960_s0 = sld [smem:[#allocation22_spill]]  ;;  %s781_s7 = int_to_ptr.vmem [resolvable:$true] %s117_s7 }
  0x1e   : > { %p790_p0 = pnand %p416_p13, %p752_p3  ;;  %s105_s26 = scalar_lea.sflag [#allocation6], %s104_s29 }
  0x20   : > { %p493_p5 = pneg %p790_p0 }
  0x23   : > { %s786_s22 = scalar_lea.hbm %s960_s0, %s383_s8  ;;  %s496_s4 = scalar_lea.hbm %s960_s0, 512 }
  0x24   : > { %s491_s27 = scalar_lea.hbm %s786_s22, 128  ;;  %p497_p3 = scmp.lt.u32.totalorder %s786_s22, %s960_s0 }
  0x25   : > { %p492_p4 = scmp.ne.s32.totalorder %s786_s22, %s491_s27  ;;  %p498_p10 = scmp.lt.u32.totalorder %s496_s4, %s491_s27 }
  0x26   : > { %p500_p13 = scmp.lt.u32.totalorder %s491_s27, %s786_s22 }
  0x27   : > { %p494_p6 = pnand %p493_p5, %p492_p4  ;;  %p499_p11 = por %p498_p10, %p497_p3 }
  0x29   : > { %p495_p7 = pneg %p494_p6  ;;  %p501_p1 = por %p500_p13, %p499_p11 }
  0x2b   : > { %p502_p2 = pnand %p501_p1, %p495_p7 }
  0x2d   : > { %505 = shalt.err (!%p502_p2)
}
  0x2e   : > { %s506_s29 = scalar_lea.vmem %s781_s7, 128  ;;  %s673_s8 = smov [#allocation5]  }
  0x2f   : > { %p507_p4 = scmp.ne.s32.totalorder %s781_s7, %s506_s29  ;;  %s511_s17 = sshll.u32 %s673_s8, 4  ;;  %s512_s17 = int_to_ptr.vmem [resolvable:$false] %s511_s17 }
  0x30   : > { %s513_s18 = scalar_lea.vmem %s512_s17, 256  ;;  %p514_p9 = scmp.lt.s32.totalorder %s781_s7, %s512_s17 }
  0x31   : > { %p509_p6 = pnand %p507_p4, %p493_p5  ;;  %p515_p3 = scmp.lt.s32.totalorder %s513_s18, %s506_s29 }
  0x33   : > { %p510_p12 = pneg %p509_p6  ;;  %p516_p10 = por %p515_p3, %p514_p9 }
  0x35   : > { %p517_p11 = pnand %p516_p10, %p510_p12 }
  0x37   : > { %520 = shalt.err (!%p517_p11)
}
  0x38   : > { %411 = dma.hbm_to_vmem [thread:$0]  (!%p790_p0), %s786_s22, 128, %s781_s7, %s105_s26  }
  0x39   : > { %p962_p1 = scmp.lt.s32.totalorder %s671_s16, 5  ;;  %p963_p2 = scmp.ge.s32.totalorder %s671_s16, 1 }
  0x3b   : > { %p123_p5 = pnand %p963_p2, %p962_p1 }
  0x3c   : > { %s826_s27 = sand.u32 (!%p123_p5), 1, %s647_s10  }
  0x3d   : > { %126 = sbr.rel (%p123_p5) target bundleno = 287 (0x11f), region = 24  ;;  %s385_s23 = sshll.u32 (!%p123_p5), %s826_s27, 3 }
  0x3e   : > { %s129_s3 = scalar_lea.sflag (!%p123_p5), [#allocation6], %s826_s27  ;;  %s132_s4 = scalar_lea.vmem (!%p123_p5), [#allocation5], %s385_s23 }
  0x44   : > { %630 = dma.done.wait (%p760_p8), %s129_s3, 128  }
  0x45   : > { %632 = vsyncadd (%p760_p8), %s129_s3, 4294967168  ;;  %s387_s22 = sshll.u32 %s655_s12, 3  ;;  %v189_v0 = vlaneseq  ;;  %s389_s26 = sshll.u32 %s659_s13, 4  ;;  %v846_v3 = vld [vmem:[%s132_s4] sm:$0xff] }
  0x46   : > { %s388_s21 = sadd.s32 4294967295, %s387_s22  ;;  %s841_s5 = sadd.s32 8, %s387_s22 }
  0x47   : > { %p153_p9 = scmp.gt.s32.totalorder %s388_s21, 0  ;;  %v837_v1 = vshrl.u32 %v189_v0, 7  ;;  %v839_v2 = vand.u32 127, %v189_v0  ;;  %s674_s24 = smov [#allocation2]  }
  0x48   : > { %s169_s6 = sshll.u32 %s674_s24, 4  ;;  %p156_p8 = scmp.lt.s32.totalorder %s841_s5, 15  ;;  %s170_s6 = int_to_ptr.vmem [resolvable:$true] %s169_s6 }
  0x49   : > { %s982_s21 = smov (!%p153_p9, %s388_s21), 0  ;;  %s675_s3 = smov [#allocation3]  }
  0x4a   : > { %s159_s29 = sadd.s32 %s389_s26, %s982_s21  ;;  %s184_s7 = sshll.u32 %s675_s3, 4  ;;  %s185_s7 = int_to_ptr.vmem [resolvable:$true] %s184_s7 }
  0x4b   : > { %s390_s8 = sshll.u32 %s159_s29, 4  ;;  %s523_s19 = scalar_lea.hbm %s946_s1, 512 }
  0x4c   : > { %s161_s23 = scalar_lea.hbm %s946_s1, %s390_s8 }
  0x4d   : > { %s521_s0 = scalar_lea.hbm %s161_s23, 16  ;;  %p524_p0 = scmp.lt.u32.totalorder %s161_s23, %s946_s1 }
  0x4e   : > { %p522_p12 = scmp.ne.s32.totalorder %s161_s23, %s521_s0  ;;  %p525_p7 = scmp.lt.u32.totalorder %s523_s19, %s521_s0 }
  0x4f   : > { %p527_p4 = scmp.lt.u32.totalorder %s521_s0, %s161_s23 }
  0x50   : > { %p526_p13 = por %p525_p7, %p524_p0 }
  0x52   : > { %p528_p6 = por %p527_p4, %p526_p13 }
  0x54   : > { %p529_p3 = pnand %p528_p6, %p522_p12 }
  0x56   : > { %532 = shalt.err (!%p529_p3)  }
  0x57   : > { %s533_s4 = scalar_lea.vmem %s170_s6, 16  ;;  %p538_p11 = scmp.lt.s32.totalorder %s170_s6, %s170_s6 }
  0x58   : > { %p534_p10 = scmp.ne.s32.totalorder %s170_s6, %s533_s4  ;;  %p539_p1 = scmp.lt.s32.totalorder %s533_s4, %s533_s4 }
  0x5a   : > { %p540_p2 = por %p539_p1, %p538_p11 }
  0x5c   : > { %p541_p5 = pnand %p540_p2, %p534_p10 }
  0x5e   : > { %544 = shalt.err (!%p541_p5)  }
  0x5f   : > { %172 = dma.hbm_to_vmem [thread:$0]  %s161_s23, 16, %s170_s6, [#allocation4] }
  0x60   : > { %s984_s5 = smov (!%p156_p8, %s841_s5), 15 }
  0x61   : > { %s173_s15 = sadd.s32 %s389_s26, %s984_s5 }
  0x62   : > { %s391_s0 = sshll.u32 %s173_s15, 4 }
  0x63   : > { %s175_s29 = scalar_lea.hbm %s946_s1, %s391_s0 }
  0x64   : > { %s545_s8 = scalar_lea.hbm %s175_s29, 16  ;;  %p548_p12 = scmp.lt.u32.totalorder %s175_s29, %s946_s1 }
  0x65   : > { %p546_p9 = scmp.ne.s32.totalorder %s175_s29, %s545_s8  ;;  %p549_p0 = scmp.lt.u32.totalorder %s523_s19, %s545_s8 }
  0x66   : > { %p551_p13 = scmp.lt.u32.totalorder %s545_s8, %s175_s29 }
  0x67   : > { %p550_p7 = por %p549_p0, %p548_p12 }
  0x69   : > { %p552_p4 = por %p551_p13, %p550_p7 }
  0x6b   : > { %p553_p6 = pnand %p552_p4, %p546_p9 }
  0x6d   : > { %556 = shalt.err (!%p553_p6)  }
  0x6e   : > { %s557_s6 = scalar_lea.vmem %s185_s7, 16  ;;  %p562_p3 = scmp.lt.s32.totalorder %s185_s7, %s185_s7 }
  0x6f   : > { %p558_p8 = scmp.ne.s32.totalorder %s185_s7, %s557_s6  ;;  %p563_p10 = scmp.lt.s32.totalorder %s557_s6, %s557_s6 }
  0x71   : > { %p564_p11 = por %p563_p10, %p562_p3 }
  0x73   : > { %p565_p1 = pnand %p564_p11, %p558_p8 }
  0x75   : > { %568 = shalt.err (!%p565_p1)  }
  0x76   : > { %187 = dma.hbm_to_vmem [thread:$0]  %s175_s29, 16, %s185_s7, [#allocation4 + $0x1] }
  0x77   : > { %s964_s26 = sshll.u32 %s826_s27, 4 }
  0x78   : > { %s870_s5 = scalar_lea.vmem [#allocation8], %s964_s26 }
  0x79   : > { %633 = dma.done.wait [#allocation4], 16 }
  0x7a   : > { %634 = vsyncadd [#allocation4], 4294967280 }
  0x7b   : > { %635 = dma.done.wait [#allocation4 + $0x1], 16 }
  0x7c   : > { %636 = vsyncadd [#allocation4 + $0x1], 4294967280  ;;  %p392_p2 = scmp.ne.s32.totalorder %s655_s12, 0 }
  0x7d   : > { %v676_v4 = vmov (!%p392_p2), 0.0  }
  0x7e   : > { %201 = sbr.rel (%p392_p2) target bundleno = 133 (0x85), region = 40  ;;  %202 = vst [vmem:[#allocation2] sm:$0x1] (!%p392_p2), %v676_v4 }
  0x85 PF: > { %p393_p5 = scmp.ne.s32.totalorder %s655_s12, 1 }
  0x86   : > { %v677_v5 = vmov (!%p393_p5), 0.0  }
  0x87   : > { %206 = sbr.rel (%p393_p5) target bundleno = 142 (0x8e), region = 44  ;;  %207 = vst [vmem:[#allocation3] sm:$0x1] (!%p393_p5), %v677_v5 }
  0x8e PF: > { %vm208_vm0 = vcmp.eq.s32.totalorder %v837_v1, 0  ;;  %v394_v6 = vld [vmem:[#allocation2] ss:$0 sm:$0xff]  ;;  %v210_v7 = vrot.slane %v846_v3, 7  ;;  %vm218_vm1 = vcmp.eq.s32.totalorder %v837_v1, 7  ;;  %v220_v8 = vrot.slane %v846_v3, 1 }
  0x8f   : > { %v395_v9 = vld [vmem:[#allocation3] ss:$0 sm:$0xff]  ;;  %v228_v10 = vmul.f32 2.0, %v846_v3  ;;  %s678_s19 = smov 1   ;;  %s679_s7 = smov 127   ;;  %vm232_vm2 = vcmp.eq.s32.totalorder %v839_v2, 0 }
  0x90   : > { %v217_v11 = vsel %vm208_vm0, %v394_v6, %v210_v7  ;;  %v227_v12 = vsel %vm218_vm1, %v395_v9, %v220_v8  ;;  %s398_s23 = sshll.u32 %s659_s13, 2  ;;  %vm236_vm3 = vcmp.eq.s32.totalorder %v839_v2, 127  ;;  %s268_s22 = sshll.u32 %s870_s5, 4  ;;  %s884_s22 = int_to_ptr.vmem [resolvable:$true] %s268_s22 }
  0x91   : > { %v231_v13 = vsub.f32 %v217_v11, %v227_v12  ;;  %v229_v14 = vadd.f32 %v228_v10, %v217_v11  ;;  %s265_s3 = sadd.s32 %s655_s12, %s398_s23  ;;  %s254_s15 = scalar_lea.sflag [#allocation7], %s826_s27 }
  0x92   : > { %s399_s24 = sshll.u32 %s265_s3, 7  ;;  %s569_s0 = scalar_lea.vmem %s884_s22, 256 }
  0x93   : > { %242 = vrot.lane.b32.xlu0 %v231_v13, %s678_s19  ;;  %v230_v15 = vadd.f32 %v229_v14, %v227_v12  ;;  %v245_v17 = vmul.f32 2.0, %v231_v13  ;;  %s889_s4 = scalar_lea.hbm %s947_s2, %s399_s24  ;;  %p570_p9 = scmp.ne.s32.totalorder %s884_s22, %s569_s0 }
  0x94   : > { %p965_p12 = scmp.ne.s32.totalorder %s958_s25, 0  ;;  %s680_s20 = smov [#allocation8]  }
  0x95   : > { %237 = vrot.lane.b32.xlu1 %v230_v15, %s679_s7  ;;  %s573_s21 = sshll.u32 %s680_s20, 4  ;;  %s574_s21 = int_to_ptr.vmem [resolvable:$false] %s573_s21 }
  0x96   : > { %p571_p0 = pnand %p570_p9, %p965_p12  ;;  %s575_s29 = scalar_lea.vmem %s574_s21, 512 }
  0x97   : > { %233 = vrot.lane.b32.xlu0 %v230_v15, %s678_s19  ;;  %p576_p13 = scmp.lt.s32.totalorder %s884_s22, %s574_s21  ;;  %p577_p4 = scmp.lt.s32.totalorder %s575_s29, %s569_s0 }
  0x98   : > { %p572_p7 = pneg %p571_p0 }
  0x99   : > { %247 = vrot.lane.b32.xlu1 %v231_v13, %s679_s7  ;;  %p578_p6 = por %p577_p4, %p576_p13 }
  0x9b   : > { %p579_p8 = pnand %p578_p6, %p572_p7 }
 0x105   : > { %v243_v16 = vpop.permute.xlu0 %242 }
 0x106   : > { %v244_v19 = vsel %vm232_vm2, 0.0, %v243_v16 }
 0x107   : > { %v238_v18 = vpop.permute.xlu1 %237  ;;  %v246_v23 = vadd.f32 %v245_v17, %v244_v19 }
 0x108   : > { %v239_v21 = vsel %vm236_vm3, 0.0, %v238_v18 }
 0x109   : > { %v234_v20 = vpop.permute.xlu0 %233 }
 0x10a   : > { %v235_v22 = vsel %vm232_vm2, 0.0, %v234_v20 }
 0x10b   : > { %v240_v24 = vsub.f32 %v235_v22, %v239_v21  ;;  %v248_v25 = vpop.permute.xlu1 %247 }
 0x10c   : > { %v249_v26 = vsel %vm236_vm3, 0.0, %v248_v25 }
 0x10d   : > { %241 = vst [vmem:[%s870_s5] sm:$0xff] %v240_v24  ;;  %v250_v27 = vadd.f32 %v249_v26, %v246_v23 }
 0x10f   : > { %396 = vst [vmem:[%s870_s5 + $0x8] sm:$0xff] %v250_v27 }
 0x110   : > { %582 = shalt.err (!%p579_p8)
}
 0x111   : > { %s583_s8 = scalar_lea.hbm %s889_s4, 256  ;;  %s587_s6 = scalar_lea.hbm %s947_s2, 1024 }
 0x112   : > { %p584_p3 = scmp.ne.s32.totalorder %s889_s4, %s583_s8  ;;  %p588_p1 = scmp.lt.u32.totalorder %s889_s4, %s947_s2 }
 0x113   : > { %p589_p2 = scmp.lt.u32.totalorder %s587_s6, %s583_s8  ;;  %p591_p9 = scmp.lt.u32.totalorder %s583_s8, %s889_s4 }
 0x114   : > { %p585_p10 = pnand %p584_p3, %p965_p12 }
 0x115   : > { %p590_p5 = por %p589_p2, %p588_p1 }
 0x116   : > { %p586_p11 = pneg %p585_p10 }
 0x117   : > { %p592_p0 = por %p591_p9, %p590_p5 }
 0x119   : > { %p593_p7 = pnand %p592_p0, %p586_p11 }
 0x11b   : > { %596 = shalt.err (!%p593_p7)
}
 0x11c   : > { %s681_s19 = smov 128   ;;  %s682_s7 = smov 256  }
 0x11d   : > { %s683_s23 = smov 8  }
 0x11e   : > { %406 = dma.vmem_to_hbm [thread:$0]  (%p965_p12), %s884_s22, 256, %s889_s4, %s254_s15, %s681_s19, %s682_s7, %s683_s23  }
 0x11f PF: > { %p417_p13 = scmp.ge.s32.totalorder %s671_s16, 2  ;;  %s283_s3 = sand.u32 1, %s643_s9  }
 0x120   : > { %p966_p4 = scmp.ne.s32.totalorder %s959_s28, 0  ;;  %s284_s24 = scalar_lea.sflag [#allocation7], %s283_s3 }
 0x122   : > { %p413_p6 = pnand %p417_p13, %p966_p4 }
 0x124   : > { %638 = dma.done.wait (!%p413_p6), %s284_s24, 256  }
 0x125   : > { %640 = vsyncadd (!%p413_p6), %s284_s24, 4294967040  ;;  %s18_s16 = sadd.s32 1, %s671_s16   ;;  %s967_s13 = sld [smem:[#allocation19_spill]] }
 0x126   : > { %p15_p8 = scmp.ge.s32.totalorder %s18_s16, 6   ;;  %s968_s25 = sld [smem:[#allocation20_spill]] }
 0x127   : > { %s969_s15 = sld [smem:[#allocation21_spill]]  ;;  %s970_s9 = smov %s647_s10 }
 0x128   : > { %s971_s10 = smov %s651_s11  ;;  %s972_s11 = smov %s777_s30 }
 0x129   : > { %s973_s12 = smov %s663_s14  ;;  %17 = sbr.rel (!%p15_p8) target bundleno = 9 (0x9), region = 90 }
 0x12c   : > { %s974_s14 = smov %s968_s25 }
 0x130   :  { %289 = vsyncpa [#allocation6], 1 }
 0x131   :  { %291 = vsyncpa [#allocation6 + $0x1], 1 }
 0x132   :  { %292 = vsyncpa [#allocation7], 1 }
 0x133   :  { %294 = vsyncpa [#allocation7 + $0x1], 1 }
 0x134   :  { %295 = vsyncmov [#allocation4] }
 0x137   :  { %s296_s28 = vpop.sfrf %295 }
 0x138   :  { %p402_p12 = scmp.ne.s32.totalorder %s296_s28, 0 }
 0x13a   :  { %300 = shalt.err (%p402_p12)  }
 0x13b   :  { %302 = vsyncmov [#allocation4 + $0x1] }
 0x13e   :  { %s303_s30 = vpop.sfrf %302 }
 0x13f   :  { %p403_p3 = scmp.ne.s32.totalorder %s303_s30, 0 }
 0x141   :  { %307 = shalt.err (%p403_p3)  }

</bundles_post_ra>
